<compile_context>
chip_gen: v5e
topology: v5e:2x2
jax: 0.10.0
libtpu: 0.0.40
codegen_flags: <defaults>
</compile_context>

<pallas_src>
import functools

import jax
import jax.numpy as jnp
from jax.experimental import pallas as pl
from jax.experimental.pallas import tpu as pltpu


def _round_up(x: int, mult: int) -> int:
    return (x + mult - 1) // mult * mult


def _key_layer_kernel(x_ref, w_ref, b_ref, o_ref, acc_ref):
    # x_ref: (TM, TK) compute dtype, w_ref: (TK, TN) compute dtype,
    # b_ref: (1, TN) f32, o_ref: (TM, TN) out dtype, acc_ref: (TM, TN) f32.
    kk = pl.program_id(2)

    @pl.when(kk == 0)
    def _():
        acc_ref[...] = jnp.zeros_like(acc_ref)

    acc_ref[...] += jnp.dot(x_ref[...], w_ref[...],
                            preferred_element_type=jnp.float32)

    @pl.when(kk == pl.num_programs(2) - 1)
    def _():
        # Bias added in f32 before the single final down-cast.
        o_ref[...] = (acc_ref[...] + b_ref[...]).astype(o_ref.dtype)


def prepare_key_layer_params(weight_t, bias, compute_dtype=jnp.bfloat16):
    """One-time parameter prep (call at init, NOT per forward).

    Casts the transposed weight (d_model, d_model*n_heads) to the MXU compute
    dtype and reshapes the bias to (1, N) f32, so the jitted forward performs
    no per-call weight-sized cast/pad HBM pass.
    """
    n = weight_t.shape[1]
    return weight_t.astype(compute_dtype), bias.astype(jnp.float32).reshape(1, n)


@functools.partial(
    jax.jit, static_argnames=("tm", "tn", "tk", "compute_dtype", "out_dtype"))
def key_layer_forward(x, weight_t, bias, *, tm=256, tn=1024, tk=2048,
                      compute_dtype=jnp.bfloat16, out_dtype=None):
    """y = x @ weight_t + bias  (== nn.Linear(d_model, d_model*n_heads)).

    x:        (batch, seq, d_model)
    weight_t: (d_model, d_model*n_heads), ideally already in compute_dtype
              (see prepare_key_layer_params)
    bias:     (d_model*n_heads,) or (1, d_model*n_heads)
    returns:  (batch, seq, d_model*n_heads) in out_dtype (default: x.dtype)
    """
    batch, seq, d_model = x.shape
    k, n = weight_t.shape
    assert k == d_model
    m = batch * seq
    out_dtype = x.dtype if out_dtype is None else out_dtype

    # Inputs in MXU-native compute dtype (no-ops if already pre-cast).
    x2d = x.reshape(m, k)
    if x2d.dtype != compute_dtype:
        x2d = x2d.astype(compute_dtype)
    w = weight_t if weight_t.dtype == compute_dtype else weight_t.astype(compute_dtype)
    b2d = bias.reshape(1, n)
    if b2d.dtype != jnp.float32:
        b2d = b2d.astype(jnp.float32)

    # Effective tile sizes: respect (8, 128) block tiling, never exceed the
    # (rounded-up) array extents. Ragged M / N tiles are handled by Pallas
    # boundary masking (reads past the edge are discarded on write).
    tm_eff = min(tm, _round_up(m, 8))
    tn_eff = min(tn, _round_up(n, 128))
    # K tiling only when it divides K exactly (garbage must never enter the
    # contraction); otherwise keep the full-K stripe.
    tk_eff = tk if (k > tk and k % tk == 0) else k

    gj = pl.cdiv(n, tn_eff)   # output-column tiles (outer: weight stripe reuse)
    gi = pl.cdiv(m, tm_eff)   # row tiles
    gk = pl.cdiv(k, tk_eff)   # reduction tiles (innermost, "arbitrary")

    cdt_bytes = jnp.dtype(compute_dtype).itemsize
    out_bytes = jnp.dtype(out_dtype).itemsize

    # Explicit VMEM budget: double-buffered blocks + f32 accumulator + headroom
    # (keeps tile sweeps deterministic across v5e/v6e/v7x default limits).
    vmem_bytes = (2 * tm_eff * tk_eff * cdt_bytes      # x blocks
                  + 2 * tk_eff * tn_eff * cdt_bytes    # weight blocks
                  + 2 * tn_eff * 4                     # bias blocks
                  + 2 * tm_eff * tn_eff * out_bytes    # output blocks
                  + tm_eff * tn_eff * 4)               # accumulator scratch
    vmem_limit = min(max(vmem_bytes * 5 // 4 + (2 << 20), 16 << 20), 64 << 20)

    # Weight is read once total when the full-K stripe is resident (gk == 1),
    # gi times when the reduction axis is tiled.
    w_passes = 1 if gk == 1 else gi
    cost = pl.CostEstimate(
        flops=2 * m * n * k,
        transcendentals=0,
        bytes_accessed=(gj * m * k * cdt_bytes          # x re-streamed per j
                        + w_passes * k * n * cdt_bytes   # weight
                        + n * 4                          # bias
                        + m * n * out_bytes),            # output writeback
    )

    out2d = pl.pallas_call(
        _key_layer_kernel,
        out_shape=jax.ShapeDtypeStruct((m, n), out_dtype),
        grid_spec=pltpu.PrefetchScalarGridSpec(
            num_scalar_prefetch=0,
            grid=(gj, gi, gk),  # j outer -> (K, tn) weight stripe reused over i
            in_specs=[
                pl.BlockSpec((tm_eff, tk_eff), lambda j, i, kk: (i, kk)),  # x
                pl.BlockSpec((tk_eff, tn_eff), lambda j, i, kk: (kk, j)),  # W
                pl.BlockSpec((1, tn_eff), lambda j, i, kk: (0, j)),        # bias
            ],
            out_specs=pl.BlockSpec((tm_eff, tn_eff), lambda j, i, kk: (i, j)),
            scratch_shapes=[pltpu.VMEM((tm_eff, tn_eff), jnp.float32)],
        ),
        compiler_params=pltpu.CompilerParams(
            dimension_semantics=("parallel", "parallel", "arbitrary"),
            vmem_limit_bytes=int(vmem_limit),
        ),
        cost_estimate=cost,
    )(x2d, w, b2d)

    return out2d.reshape(batch, seq, n)


def init_key_layer_params(key, d_model, n_heads, dtype=jnp.float32):
    """Deterministic init mirroring nn.Linear default (uniform +/- 1/sqrt(fan_in))."""
    out_features = d_model * n_heads
    k_w, k_b = jax.random.split(key)
    bound = 1.0 / (d_model ** 0.5)
    # PyTorch stores weight as (out_features, in_features); keep it transposed.
    weight = jax.random.uniform(
        k_w, (out_features, d_model), dtype=dtype, minval=-bound, maxval=bound
    )
    bias = jax.random.uniform(
        k_b, (out_features,), dtype=dtype, minval=-bound, maxval=bound
    )
    weight_t = weight.T  # (d_model, out_features)
    return weight_t, bias


if __name__ == "__main__":
    d_model = 32
    n_heads = 4
    batch = 2
    seq = 8

    key = jax.random.PRNGKey(0)
    k_x, k_p = jax.random.split(key)

    x = jax.random.normal(k_x, (batch, seq, d_model), dtype=jnp.float32)
    weight_t, bias = init_key_layer_params(k_p, d_model, n_heads)

    # One-time param prep (weight pre-cast to bf16, bias as (1, N) f32).
    w_prep, b_prep = prepare_key_layer_params(weight_t, bias)

    y = key_layer_forward(x, w_prep, b_prep)
    y = jax.block_until_ready(y)
    assert y.shape == (batch, seq, d_model * n_heads)
    assert y.dtype == x.dtype

    # Reference 1: same bf16-input / f32-accumulate math as the kernel.
    y_ref_bf16 = (jnp.dot(x.reshape(-1, d_model).astype(jnp.bfloat16),
                          weight_t.astype(jnp.bfloat16),
                          preferred_element_type=jnp.float32)
                  + bias).reshape(batch, seq, -1)
    assert jnp.allclose(y, y_ref_bf16, atol=1e-2, rtol=1e-2)

    # Reference 2: full-f32 nn.Linear forward (loose tolerance for bf16 inputs).
    y_ref_f32 = x @ weight_t + bias
    assert jnp.allclose(y, y_ref_f32, atol=5e-2, rtol=5e-2)

    # Ragged shape: m = 18 is not a multiple of 8 -> exercises the boundary
    # masking path (no host-side padding or output slicing anymore).
    x2 = jax.random.normal(jax.random.PRNGKey(1), (2, 9, d_model),
                           dtype=jnp.float32)
    y2 = jax.block_until_ready(key_layer_forward(x2, w_prep, b_prep))
    assert y2.shape == (2, 9, d_model * n_heads)
    assert jnp.allclose(y2, x2 @ weight_t + bias, atol=5e-2, rtol=5e-2)

    print("KERNEL_OK")
</pallas_src>

<mosaic_0001>
module attributes {stable_mosaic.version = 11 : i64} {
  func.func @_key_layer_kernel(%arg0: i32, %arg1: i32, %arg2: i32, %arg3: memref<16x32xbf16, #tpu.memory_space<vmem>>, %arg4: memref<32x128xbf16, #tpu.memory_space<vmem>>, %arg5: memref<1x128xf32, #tpu.memory_space<vmem>>, %arg6: memref<16x128xf32, #tpu.memory_space<vmem>>, %arg7: memref<16x128xf32, #tpu.memory_space<vmem>>) attributes {dimension_semantics = [#tpu.dimension_semantics<parallel>, #tpu.dimension_semantics<parallel>, #tpu.dimension_semantics<arbitrary>], iteration_bounds = array<i64: 1, 1, 1>, scalar_prefetch = 0 : i64, scratch_operands = 1 : i64, tpu.core_type = #tpu.core_type<tc>, window_params = [{transform_indices = @transform_0, window_bounds = array<i64: 16, 32>}, {transform_indices = @transform_1, window_bounds = array<i64: 32, 128>}, {transform_indices = @transform_2, window_bounds = array<i64: 1, 128>}, {transform_indices = @transform_3, window_bounds = array<i64: 16, 128>}]} {
    %c0_i32 = arith.constant 0 : i32
    %0 = arith.cmpi eq, %arg2, %c0_i32 : i32
    %1 = arith.extui %0 : i1 to i32
    %c0_i32_0 = arith.constant 0 : i32
    %2 = arith.cmpi ne, %1, %c0_i32_0 : i32
    scf.if %2 {
      %cst_10 = arith.constant 0.000000e+00 : f32
      %12 = vector.broadcast %cst_10 : f32 to vector<16x128xf32>
      %c0_11 = arith.constant 0 : index
      %c0_12 = arith.constant 0 : index
      %13 = vector.load %arg7[%c0_11, %c0_12] : memref<16x128xf32, #tpu.memory_space<vmem>>, vector<16x128xf32>
      tpu.vector_store %arg7[%c0_11, %c0_12], %12 {strides = array<i32>} : memref<16x128xf32, #tpu.memory_space<vmem>>, vector<16x128xf32>,
    } else {
    }
    %c0 = arith.constant 0 : index
    %c0_1 = arith.constant 0 : index
    %3 = vector.load %arg7[%c0, %c0_1] : memref<16x128xf32, #tpu.memory_space<vmem>>, vector<16x128xf32>
    %c0_2 = arith.constant 0 : index
    %c0_3 = arith.constant 0 : index
    %4 = vector.load %arg3[%c0_2, %c0_3] : memref<16x32xbf16, #tpu.memory_space<vmem>>, vector<16x32xbf16>
    %c0_4 = arith.constant 0 : index
    %c0_5 = arith.constant 0 : index
    %5 = vector.load %arg4[%c0_4, %c0_5] : memref<32x128xbf16, #tpu.memory_space<vmem>>, vector<32x128xbf16>
    %cst = arith.constant dense<0.000000e+00> : vector<16x128xf32>
    %6 = tpu.matmul %4, %5, %cst {dimension_numbers = #tpu.dot_dimension_numbers<[1], [0], [0], [1], [0, 0, 1, 1], [], []>} : vector<16x32xbf16>, vector<32x128xbf16>, vector<16x128xf32> -> vector<16x128xf32>
    %7 = arith.addf %3, %6 : vector<16x128xf32>
    %c0_6 = arith.constant 0 : index
    %c0_7 = arith.constant 0 : index
    %8 = vector.load %arg7[%c0_6, %c0_7] : memref<16x128xf32, #tpu.memory_space<vmem>>, vector<16x128xf32>
    tpu.vector_store %arg7[%c0_6, %c0_7], %7 {strides = array<i32>} : memref<16x128xf32, #tpu.memory_space<vmem>>, vector<16x128xf32>,
    %c0_i32_8 = arith.constant 0 : i32
    %9 = arith.cmpi eq, %arg2, %c0_i32_8 : i32
    %10 = arith.extui %9 : i1 to i32
    %c0_i32_9 = arith.constant 0 : i32
    %11 = arith.cmpi ne, %10, %c0_i32_9 : i32
    scf.if %11 {
      %c0_10 = arith.constant 0 : index
      %c0_11 = arith.constant 0 : index
      %12 = vector.load %arg7[%c0_10, %c0_11] : memref<16x128xf32, #tpu.memory_space<vmem>>, vector<16x128xf32>
      %c0_12 = arith.constant 0 : index
      %c0_13 = arith.constant 0 : index
      %13 = vector.load %arg5[%c0_12, %c0_13] : memref<1x128xf32, #tpu.memory_space<vmem>>, vector<1x128xf32>
      %14 = vector.broadcast %13 : vector<1x128xf32> to vector<16x128xf32>
      %15 = arith.addf %12, %14 : vector<16x128xf32>
      %c0_14 = arith.constant 0 : index
      %c0_15 = arith.constant 0 : index
      %16 = vector.load %arg6[%c0_14, %c0_15] : memref<16x128xf32, #tpu.memory_space<vmem>>, vector<16x128xf32>
      tpu.vector_store %arg6[%c0_14, %c0_15], %15 {strides = array<i32>} : memref<16x128xf32, #tpu.memory_space<vmem>>, vector<16x128xf32>,
    } else {
    }
    return
  }
  func.func @transform_0(%arg0: i32, %arg1: i32, %arg2: i32) -> (i32, i32) {
    %c0_i32 = arith.constant 0 : i32
    return %arg1, %arg2 : i32, i32
  }
  func.func @transform_1(%arg0: i32, %arg1: i32, %arg2: i32) -> (i32, i32) {
    %c0_i32 = arith.constant 0 : i32
    return %arg2, %arg0 : i32, i32
  }
  func.func @transform_2(%arg0: i32, %arg1: i32, %arg2: i32) -> (i32, i32) {
    %c0_i32 = arith.constant 0 : i32
    %c0_i32_0 = arith.constant 0 : i32
    return %c0_i32, %arg0 : i32, i32
  }
  func.func @transform_3(%arg0: i32, %arg1: i32, %arg2: i32) -> (i32, i32) {
    %c0_i32 = arith.constant 0 : i32
    return %arg1, %arg0 : i32, i32
  }
}

</mosaic_0001>

<bundles_post_ra>
// kernel: key_layer_forward.1
= control target key start
LH: loop header
LB: loop body
LE: loop exit
PB: predicated region body
PF: predicated region fallthrough
CT: control target
= control target key end

     0   :  { %s184_s0 = inlined_call_operand.vmem [shape: bf16[16,32], index: 0, kind: input, shape index: {}]   ;;  %s185_s1 = inlined_call_operand.vmem [shape: bf16[32,128], index: 1, kind: input, shape index: {}]   ;;  %s186_s2 = inlined_call_operand.vmem [shape: f32[1,128], index: 2, kind: input, shape index: {}]   ;;  %s187_s3 = inlined_call_operand.hbm [shape: f32[16,128], index: 3, kind: output, shape index: {}]  }
   0x1   :  { %v115_v0 = vld [vmem:[%s185_s1 + $0x8] sm:$0xff] }
   0x2   :  { %8 = vsyncpa [#allocation4], 0  ;;  %57 = vmatpush.bf16.msra.mxu0 %v115_v0  ;;  %v114_v1 = vld [vmem:[%s185_s1] sm:$0xff]  ;;  %vm47_vm0 = vcmask 261120   ;;  %s146_s20 = smov [#allocation3]   ;;  %s88_s1 = sshll.u32 %s187_s3, 4  ;;  %s89_s1 = int_to_ptr.hbm [resolvable:$true] %s88_s1 }
   0x3   :  { %v113_v2 = vld [vmem:[%s184_s0] sm:$0xff]  ;;  %s86_s21 = sshll.u32 %s146_s20, 4  ;;  %s147_s0 = smov 128   ;;  %s87_s21 = int_to_ptr.vmem [resolvable:$true] %s86_s21 }
   0x4   :  { %v119_v3 = vld [vmem:[%s186_s2] ss:$0 sm:$0xff]  ;;  %s148_s24 = smov 8  }
   0x6   :  { %58 = vmatpush.bf16.msra.mxu0 %v114_v1 }
   0x9   :  { %112 = vmatmul.msk.bf16.vlgmr.msra.gmra.mxu0 %vm47_vm0, %v113_v2 }
  0x86   :  { %v60_v4 = vpop.f32.mrf.mxu0 }
  0x87   :  { %v78_v5 = vadd.f32 %v119_v3, %v60_v4 }
  0x89   :  { %80 = vst [vmem:[#allocation3] sm:$0xff] %v78_v5 }
  0x8e   :  { %v62_v6 = vpop.f32.mrf.mxu0 }
  0x8f   :  { %v79_v7 = vadd.f32 %v119_v3, %v62_v6 }
  0x91   :  { %81 = vst [vmem:[#allocation3 + $0x8] sm:$0xff] %v79_v7 }
  0x92   :  { %94 = dma.vmem_to_hbm [thread:$0]  %s87_s21, 256, %s89_s1, [#allocation4], %s147_s0, %s147_s0, %s148_s24  }
  0x93   :  { %144 = dma.done.wait [#allocation4], 256  }
  0x94   :  { %145 = vsyncadd [#allocation4], 4294967040 }
  0x95   :  { %99 = vsyncpa [#allocation4], 1 }

</bundles_post_ra>
